<compile_context>
chip_gen: v5e
topology: v5e:2x2
jax: 0.10.0
libtpu: 0.0.40
codegen_flags: <defaults>
</compile_context>

<pallas_src>
import functools

import jax
import jax.numpy as jnp
from jax.experimental import pallas as pl
from jax.experimental.pallas import tpu as pltpu

_LANE = 128      # lane width (last dim multiple)
_SUBLANE = 32    # native sublane count for int8/bool-packed outputs
_MAX_TB = 256    # max sublane tile
_MAX_TT = 2048   # max lane tile
_PALLAS_MIN_ELEMS = 1 << 16  # below this, plain JAX is faster (launch overhead)


def _round_up(x: int, m: int) -> int:
    return ((x + m - 1) // m) * m


def _pad_mask_kernel(pad_ref, x_ref, mask_ref):
    # pad_ref : SMEM scalar-prefetch (1,) int32
    # x_ref   : VMEM tile [tb, tt] int32
    # mask_ref: VMEM tile [tb, tt] bool  (x != pad_idx)
    mask_ref[...] = x_ref[...] != pad_ref[0]


@functools.partial(jax.jit, static_argnames=("pad_idx", "use_pallas"))
def _identity_layer_pallas(tokens, *, pad_idx: int, use_pallas: bool):
    b, t = tokens.shape
    if not use_pallas:
        return tokens, tokens != pad_idx

    x = tokens.astype(jnp.int32)

    # Tile sizes: lane dim multiple of 128, sublane multiple of 32 (bool mask).
    tb = min(_MAX_TB, _round_up(b, _SUBLANE))
    tt = min(_MAX_TT, _round_up(t, _LANE))
    bp = _round_up(b, tb)
    tp = _round_up(t, tt)
    if (bp, tp) != (b, t):
        # Pad ragged edges so every tile is (sublane,lane)-aligned; padded region
        # is sliced off below, so the fill value is irrelevant (use pad_idx).
        x = jnp.pad(x, ((0, bp - b), (0, tp - t)), constant_values=pad_idx)

    pad = jnp.asarray([pad_idx], dtype=jnp.int32)

    grid = (bp // tb, tp // tt)
    mask_padded = pl.pallas_call(
        _pad_mask_kernel,
        out_shape=jax.ShapeDtypeStruct((bp, tp), jnp.bool_),
        grid_spec=pltpu.PrefetchScalarGridSpec(
            num_scalar_prefetch=1,
            grid=grid,
            in_specs=[pl.BlockSpec((tb, tt), lambda i, j, pad_ref: (i, j))],
            out_specs=pl.BlockSpec((tb, tt), lambda i, j, pad_ref: (i, j)),
        ),
        compiler_params=pltpu.CompilerParams(
            dimension_semantics=("parallel", "parallel"),
            vmem_limit_bytes=48 << 20,  # safe on v7x (64 MiB phys), plenty on v5e/v6e
        ),
        cost_estimate=pl.CostEstimate(
            flops=0,
            transcendentals=0,
            bytes_accessed=bp * tp * 4 + bp * tp * 1,  # int32 read + bool write
        ),
    )(pad, x)

    mask = mask_padded[:b, :t]
    # Identity output comes straight from the wrapper: zero extra HBM traffic.
    return tokens, mask


def identity_layer_forward(tokens: jax.Array, pad_idx: int, *, force_pallas: bool | None = None):
    """JAX/Pallas equivalent of IdentityLayer.forward.

    Returns (tokens, tokens != pad_idx). The identity output is the input array
    itself; only the pad mask is produced by the Pallas kernel (for large inputs).
    """
    assert tokens.ndim == 2, "expected [batch, seq] token ids"
    b, t = tokens.shape
    if force_pallas is None:
        use_pallas = (b * t) >= _PALLAS_MIN_ELEMS
    else:
        use_pallas = force_pallas
    return _identity_layer_pallas(tokens, pad_idx=int(pad_idx), use_pallas=use_pallas)


if __name__ == "__main__":
    key = jax.random.PRNGKey(0)
    pad_idx = 0  # dictionary[dictionary.null_token] — deterministic synthetic choice

    # --- Case 1: tiny shape consistent with the module (batch=2, seq=8),
    #     forced through the Pallas path so the kernel actually runs.
    k1, k2 = jax.random.split(key)
    tokens_small = jax.random.randint(k1, (2, 8), minval=0, maxval=50, dtype=jnp.int32)
    tokens_small = tokens_small.at[0, 3].set(pad_idx)  # ensure at least one pad token

    out_s, mask_s = identity_layer_forward(tokens_small, pad_idx, force_pallas=True)
    jax.block_until_ready((out_s, mask_s))
    assert jnp.array_equal(out_s, tokens_small)
    assert jnp.array_equal(mask_s, tokens_small != pad_idx)
    assert mask_s.dtype == jnp.bool_

    # --- Case 2: non-tile-aligned shape to exercise padding + tiling (still small).
    tokens_big = jax.random.randint(k2, (8, 300), minval=0, maxval=50, dtype=jnp.int32)
    tokens_big = tokens_big.at[2, 17].set(pad_idx)

    out_b, mask_b = identity_layer_forward(tokens_big, pad_idx, force_pallas=True)
    jax.block_until_ready((out_b, mask_b))
    assert jnp.array_equal(out_b, tokens_big)
    assert jnp.array_equal(mask_b, tokens_big != pad_idx)

    # --- Case 3: default small-input fast path (plain JAX) matches kernel path.
    out_f, mask_f = identity_layer_forward(tokens_small, pad_idx)
    jax.block_until_ready((out_f, mask_f))
    assert jnp.array_equal(out_f, out_s)
    assert jnp.array_equal(mask_f, mask_s)

    print("KERNEL_OK")
</pallas_src>

<mosaic_0001>
module attributes {stable_mosaic.version = 11 : i64} {
  func.func @_pad_mask_kernel(%arg0: i32, %arg1: i32, %arg2: memref<1xi32, #tpu.memory_space<smem>>, %arg3: memref<32x128xi32, #tpu.memory_space<vmem>>, %arg4: memref<32x128xi32, #tpu.memory_space<vmem>>) attributes {dimension_semantics = [#tpu.dimension_semantics<parallel>, #tpu.dimension_semantics<parallel>], iteration_bounds = array<i64: 1, 1>, scalar_prefetch = 1 : i64, scratch_operands = 0 : i64, tpu.core_type = #tpu.core_type<tc>, window_params = [{transform_indices = @transform_0, window_bounds = array<i64: 32, 128>}, {transform_indices = @transform_1, window_bounds = array<i64: 32, 128>}]} {
    %c0 = arith.constant 0 : index
    %c0_0 = arith.constant 0 : index
    %0 = vector.load %arg3[%c0, %c0_0] : memref<32x128xi32, #tpu.memory_space<vmem>>, vector<32x128xi32>
    %c0_1 = arith.constant 0 : index
    %1 = memref.load %arg2[%c0_1] : memref<1xi32, #tpu.memory_space<smem>>
    %2 = vector.broadcast %1 : i32 to vector<32x128xi32>
    %3 = arith.cmpi ne, %0, %2 : vector<32x128xi32>
    %c0_2 = arith.constant 0 : index
    %c0_3 = arith.constant 0 : index
    %4 = vector.load %arg4[%c0_2, %c0_3] : memref<32x128xi32, #tpu.memory_space<vmem>>, vector<32x128xi32>
    %5 = arith.extui %3 : vector<32x128xi1> to vector<32x128xi32>
    %cst = arith.constant dense<0> : vector<32x128xi32>
    %6 = arith.cmpi ne, %4, %cst : vector<32x128xi32>
    tpu.vector_store %arg4[%c0_2, %c0_3], %5 {strides = array<i32>} : memref<32x128xi32, #tpu.memory_space<vmem>>, vector<32x128xi32>,
    return
  }
  func.func @transform_0(%arg0: i32, %arg1: i32, %arg2: memref<1xi32, #tpu.memory_space<smem>>) -> (i32, i32) {
    %c0_i32 = arith.constant 0 : i32
    return %arg0, %arg1 : i32, i32
  }
  func.func @transform_1(%arg0: i32, %arg1: i32, %arg2: memref<1xi32, #tpu.memory_space<smem>>) -> (i32, i32) {
    %c0_i32 = arith.constant 0 : i32
    return %arg0, %arg1 : i32, i32
  }
}

</mosaic_0001>

<bundles_post_ra>
// kernel: _identity_layer_pallas.1
= control target key start
LH: loop header
LB: loop body
LE: loop exit
PB: predicated region body
PF: predicated region fallthrough
CT: control target
= control target key end

     0   :  { %v33_v5 = vmov 0   ;;  %s76_s0 = inlined_call_operand.<no memory space> [shape: s32[1], index: 0, kind: input, shape index: {}]   ;;  %s77_s1 = inlined_call_operand.vmem [shape: s32[32,128], index: 1, kind: input, shape index: {}]   ;;  %s78_s2 = inlined_call_operand.vmem [shape: s32[32,128], index: 2, kind: output, shape index: {}]  }
   0x1   :  { %v10_v0 = vld [vmem:[%s77_s1] sm:$0xff]  ;;  %v15_v1 = vstv %s76_s0  ;;  %v11_v2 = vld [vmem:[%s77_s1 + $0x8] sm:$0xff]  ;;  %v12_v3 = vld [vmem:[%s77_s1 + $0x10] sm:$0xff] }
   0x2   :  { %vm16_vm0 = vcmp.ne.s32.totalorder %v10_v0, %v15_v1  ;;  %vm17_vm1 = vcmp.ne.s32.totalorder %v11_v2, %v15_v1  ;;  %vm18_vm2 = vcmp.ne.s32.totalorder %v12_v3, %v15_v1  ;;  %v13_v4 = vld [vmem:[%s77_s1 + $0x18] sm:$0xff] }
   0x3   :  { %v20_v6 = vsel %vm16_vm0, 1, %v33_v5  ;;  %v21_v7 = vsel %vm17_vm1, 1, %v33_v5  ;;  %v22_v8 = vsel %vm18_vm2, 1, %v33_v5  ;;  %vm19_vm3 = vcmp.ne.s32.totalorder %v13_v4, %v15_v1 }
   0x4   :  { %24 = vst [vmem:[%s78_s2] sm:$0xff] %v20_v6  ;;  %v23_v9 = vsel %vm19_vm3, 1, %v33_v5 }
   0x5   :  { %25 = vst [vmem:[%s78_s2 + $0x8] sm:$0xff] %v21_v7 }
   0x6   :  { %26 = vst [vmem:[%s78_s2 + $0x10] sm:$0xff] %v22_v8 }
   0x7   :  { %27 = vst [vmem:[%s78_s2 + $0x18] sm:$0xff] %v23_v9 }

</bundles_post_ra>
